<compile_context>
chip_gen: v7x
topology: tpu7x:2x2x1
jax: 0.10.0
libtpu: 0.0.40
codegen_flags: <defaults>
</compile_context>

<pallas_src>
import functools

import jax
import jax.numpy as jnp
from jax import lax
from jax.experimental import pallas as pl
from jax.experimental.pallas import tpu as pltpu

# ----------------------------------------------------------------------------
# Module-consistent hyper-parameters (scaled down from I_CNN=2048 /
# Q_GRU_out=1024 / LINsize=1024 so the example runs tiny).
# ----------------------------------------------------------------------------
I_CNN = 128
Q_GRU_OUT = 64
Q_EMBED = 32
LINSIZE = 128
BOXCOORDS = 6
NCLS = 2
VOCAB = 50

INSIZE = BOXCOORDS + I_CNN + Q_GRU_OUT  # 198
FUSED_H = 2 * LINSIZE                   # 256: fscore-hidden ++ fcls-hidden
OUT_W = 8                               # narrow fused output (score + 2 logits + pad)

ROW_ALIGN = 16                          # bf16 sublane packing: 16-aligned row tiles


def _round_up(x, m):
    return ((x + m - 1) // m) * m


def _cdiv(a, b):
    return (a + b - 1) // b


def _choose_tiles(b, d, tile_rows):
    """Pick (images_per_tile tb, rows_per_image_tile td).

    Goals: big MXU/DMA tiles, >=2 grid steps (v7x megacore), whole images per
    tile so the question contribution broadcast stays per-image, no HBM pad.
    """
    tile_rows = max(ROW_ALIGN, (tile_rows // ROW_ALIGN) * ROW_ALIGN)
    td_img = _round_up(d, ROW_ALIGN)

    if td_img >= tile_rows:
        # Big D: one image per step along B, tile the box dim.
        td = tile_rows
        if b * _cdiv(d, td) < 2 and td >= 2 * ROW_ALIGN:
            td = _round_up(_cdiv(d, 2), ROW_ALIGN)      # split D for 2 steps
        return 1, td

    # Small D: pack tb whole images per row tile (tb divides B exactly, so the
    # only partial blocks are on the well-supported second-minor D axis).
    tb = min(b, max(1, tile_rows // td_img))
    while b % tb:
        tb -= 1
    while tb > 1 and (b // tb) < 2:                     # keep >=2 grid steps
        tb -= 1
        while b % tb:
            tb -= 1
    if tb == 1 and b < 2 and td_img >= 2 * ROW_ALIGN:
        return 1, _round_up(_cdiv(d, 2), ROW_ALIGN)     # split D for 2 steps
    return tb, td_img


# ----------------------------------------------------------------------------
# Pallas kernel: both MLP heads on one (tb images x td rows) tile.
# ----------------------------------------------------------------------------
def _rn_heads_kernel(box_ref, coords_ref, qc_ref,
                     w1b_ref, w1x_ref, w2c_ref, b2c_ref,
                     wos_ref, woc_ref, bo_ref,
                     out_ref):
    tb, td, icnn = box_ref.shape
    rows = tb * td

    # Present the row tile as a 2-D (rows, K) matmul operand.
    if tb == 1:
        box = box_ref[0]                                 # (td, I_CNN)
        coords = coords_ref[0]                           # (td, 6)
    else:
        # Image-packing path: merge (tb, td) -> rows; td is 16-aligned so the
        # sublane merge is tile-aligned (no data movement).
        box = box_ref[...].reshape(rows, icnn)
        coords = coords_ref[...].reshape(rows, BOXCOORDS)

    box = box.astype(jnp.bfloat16)        # no-op when producer already emits bf16
    coords = coords.astype(jnp.bfloat16)  # tiny (rows, 6) VPU cast

    # Fused first layer of both heads (fscore ++ fcls), contraction split by
    # input segment: the [box, qst, coords] concat is never materialized.
    h = jnp.dot(box, w1b_ref[...], preferred_element_type=jnp.float32)
    h = h + jnp.dot(coords, w1x_ref[...], preferred_element_type=jnp.float32)

    # Per-image question contribution (+ both first-layer biases).
    if tb == 1:
        h = h + qc_ref[0]                                # (1, 256) row broadcast
    else:
        h = (h.reshape(tb, td, FUSED_H) + qc_ref[...]).reshape(rows, FUSED_H)
    h = jnp.maximum(h, 0.0)                              # ReLU in f32 (VPU)

    hs = h[:, :LINSIZE]                                  # fscore hidden
    hc = h[:, LINSIZE:]                                  # fcls hidden #1

    # fcls second layer.
    hc2 = jnp.dot(hc.astype(jnp.bfloat16), w2c_ref[...],
                  preferred_element_type=jnp.float32) + b2c_ref[...]
    hc2 = jnp.maximum(hc2, 0.0)

    # Narrow fused output: lane 0 = score, lanes 1..NCLS = logits.
    out = jnp.dot(hs.astype(jnp.bfloat16), wos_ref[...],
                  preferred_element_type=jnp.float32)
    out = out + jnp.dot(hc2.astype(jnp.bfloat16), woc_ref[...],
                        preferred_element_type=jnp.float32)
    out = out + bo_ref[...]

    if tb == 1:
        out_ref[0] = out
    else:
        out_ref[...] = out.reshape(tb, td, OUT_W)


def rn_heads(box_feats, box_coords, q_contrib, head_params, *, tile_rows=512):
    """box_feats (B,D,I_CNN) [ideally bf16], box_coords (B,D,6),
    q_contrib (B,1,256) f32.  Returns scores (B,D,1), logits (B,D,NCLS)."""
    b, d, icnn = box_feats.shape
    w1b, w1x, w2cb, b2c, wos, woc, bo = head_params

    tb, td = _choose_tiles(b, d, tile_rows)
    grid = (_cdiv(b, tb), _cdiv(d, td))   # no HBM pad: tail blocks are masked

    out = pl.pallas_call(
        _rn_heads_kernel,
        out_shape=jax.ShapeDtypeStruct((b, d, OUT_W), jnp.float32),
        grid=grid,
        in_specs=[
            pl.BlockSpec((tb, td, icnn), lambda bi, di: (bi, di, 0)),
            pl.BlockSpec((tb, td, BOXCOORDS), lambda bi, di: (bi, di, 0)),
            pl.BlockSpec((tb, 1, FUSED_H), lambda bi, di: (bi, 0, 0)),
            pl.BlockSpec((icnn, FUSED_H), lambda bi, di: (0, 0)),
            pl.BlockSpec((BOXCOORDS, FUSED_H), lambda bi, di: (0, 0)),
            pl.BlockSpec((LINSIZE, LINSIZE), lambda bi, di: (0, 0)),
            pl.BlockSpec((1, LINSIZE), lambda bi, di: (0, 0)),
            pl.BlockSpec((LINSIZE, OUT_W), lambda bi, di: (0, 0)),
            pl.BlockSpec((LINSIZE, OUT_W), lambda bi, di: (0, 0)),
            pl.BlockSpec((1, OUT_W), lambda bi, di: (0, 0)),
        ],
        out_specs=pl.BlockSpec((tb, td, OUT_W), lambda bi, di: (bi, di, 0)),
        compiler_params=pltpu.CompilerParams(
            dimension_semantics=("parallel", "parallel"),
            # Above the v5e/v6e scoped defaults, below v7x's 64 MiB physical.
            # At production hyper-params (I_CNN=2048, LINSIZE=1024) shrink
            # tile_rows per generation (v5e ~256) and keep double-buffered
            # tiles + resident weights under this budget.
            vmem_limit_bytes=48 * 1024 * 1024),
    )(box_feats, box_coords, q_contrib, w1b, w1x, w2cb, b2c, wos, woc, bo)

    scores = out[..., 0:1]
    logits = out[..., 1:1 + NCLS]
    return scores, logits


# ----------------------------------------------------------------------------
# Parameter fusion (done once per call in the wrapper; tiny element ops).
# ----------------------------------------------------------------------------
def _fuse_mlp_params(mlp_params):
    w1s, b1s, w2s, b2s, w1c, b1c, w2c, b2c, w3c, b3c = mlp_params

    # First layer of both heads fused column-wise, then split by input segment
    # (concat order in the reference forward is [box_feats, qst, box_coords]).
    w1f = jnp.concatenate([w1s, w1c], axis=1)                  # (INSIZE, 256)
    w1b = w1f[:I_CNN].astype(jnp.bfloat16)                     # box rows
    w1q = w1f[I_CNN:I_CNN + Q_GRU_OUT]                         # question rows (f32)
    w1x = w1f[I_CNN + Q_GRU_OUT:].astype(jnp.bfloat16)         # coord rows (bf16 MXU)
    b1f = jnp.concatenate([b1s, b1c], axis=1)                  # (1, 256)

    # Narrow fused output layer: lane 0 = score, lanes 1..NCLS = logits.
    wos = jnp.zeros((LINSIZE, OUT_W), jnp.float32).at[:, 0:1].set(w2s)
    woc = jnp.zeros((LINSIZE, OUT_W), jnp.float32).at[:, 1:1 + NCLS].set(w3c)
    bo = (jnp.zeros((1, OUT_W), jnp.float32)
          .at[:, 0:1].set(b2s).at[:, 1:1 + NCLS].set(b3c))

    return (w1b, w1q, w1x, b1f,
            w2c.astype(jnp.bfloat16), b2c,
            wos.astype(jnp.bfloat16), woc.astype(jnp.bfloat16), bo)


# ----------------------------------------------------------------------------
# Question parser glue: deterministic embedding + single-layer GRU (PyTorch
# gate convention), returning the final hidden state.  The input projection is
# hoisted out of the scan (one batched matmul); only the h @ w_hh recurrence
# is sequential.
# TODO(synk): original QuestionParser loads a dictionary + GloVe vectors from
# files; replaced here by a deterministic random embedding table.
# ----------------------------------------------------------------------------
def gru_question_parser(token_ids, qparams):
    emb, w_ih, w_hh, b_ih, b_hh = qparams
    x = emb[token_ids]                                           # (B, T, E)
    gi_all = jnp.einsum('bte,eh->bth', x, w_ih) + b_ih           # (B, T, 3H)
    b = x.shape[0]
    h0 = jnp.zeros((b, Q_GRU_OUT), jnp.float32)

    def step(h, gi_t):
        gh = h @ w_hh + b_hh
        i_r, i_z, i_n = jnp.split(gi_t, 3, axis=-1)
        h_r, h_z, h_n = jnp.split(gh, 3, axis=-1)
        r = jax.nn.sigmoid(i_r + h_r)
        z = jax.nn.sigmoid(i_z + h_z)
        n = jnp.tanh(i_n + r * h_n)
        return (1.0 - z) * n + z * h, None

    h_last, _ = lax.scan(step, h0, jnp.swapaxes(gi_all, 0, 1))
    return h_last  # (B, Q_GRU_OUT)


# ----------------------------------------------------------------------------
# Full RN forward.
# ----------------------------------------------------------------------------
@functools.partial(jax.jit, static_argnames=("tile_rows",))
def rn_forward(box_feats, q_feats, box_coords, index, qparams, mlp_params,
               *, tile_rows=512):
    del index  # unused in the reference forward
    w1b, w1q, w1x, b1f, w2cb, b2c, wos, woc, bo = _fuse_mlp_params(mlp_params)

    q_rnn = gru_question_parser(q_feats, qparams)                # (B, H)
    # Question contribution to the fused first layer (+ both first-layer
    # biases), constant across the D boxes of each batch element.
    q_contrib = (q_rnn @ w1q + b1f)[:, None, :]                  # (B, 1, 256)

    # box_feats / box_coords are passed through in their native dtype: if the
    # producer emits bf16 (recommended), there is no cast anywhere on the box
    # stream; otherwise the cast happens in-VMEM inside the kernel (never as a
    # standalone HBM round trip).
    scores, logits = rn_heads(
        box_feats, box_coords, q_contrib,
        (w1b, w1x, w2cb, b2c, wos, woc, bo),
        tile_rows=tile_rows)
    return scores, logits


# ----------------------------------------------------------------------------
# Deterministic parameter construction.
# ----------------------------------------------------------------------------
def make_params(key):
    ks = jax.random.split(key, 16)
    s = 0.05

    def w(k, shape):
        return jax.random.normal(k, shape, jnp.float32) * s

    emb = w(ks[0], (VOCAB, Q_EMBED))
    w_ih = w(ks[1], (Q_EMBED, 3 * Q_GRU_OUT))
    w_hh = w(ks[2], (Q_GRU_OUT, 3 * Q_GRU_OUT))
    b_ih = jnp.zeros((3 * Q_GRU_OUT,), jnp.float32)
    b_hh = jnp.zeros((3 * Q_GRU_OUT,), jnp.float32)
    qparams = (emb, w_ih, w_hh, b_ih, b_hh)

    w1s = w(ks[3], (INSIZE, LINSIZE)); b1s = w(ks[4], (1, LINSIZE))
    w2s = w(ks[5], (LINSIZE, 1));      b2s = w(ks[6], (1, 1))
    w1c = w(ks[7], (INSIZE, LINSIZE)); b1c = w(ks[8], (1, LINSIZE))
    w2c = w(ks[9], (LINSIZE, LINSIZE)); b2c = w(ks[10], (1, LINSIZE))
    w3c = w(ks[11], (LINSIZE, NCLS));  b3c = w(ks[12], (1, NCLS))
    mlp_params = (w1s, b1s, w2s, b2s, w1c, b1c, w2c, b2c, w3c, b3c)
    return qparams, mlp_params


# ----------------------------------------------------------------------------
# References.
# ----------------------------------------------------------------------------
def reference_forward(box_feats, q_feats, box_coords, qparams, mlp_params):
    """Pure-JAX f32 reference with the original PyTorch structure."""
    b, d, _ = box_feats.shape
    q_rnn = gru_question_parser(q_feats, qparams)
    qst = jnp.broadcast_to(q_rnn[:, None, :], (b, d, Q_GRU_OUT))
    x = jnp.concatenate([box_feats, qst, box_coords], axis=-1)
    w1s, b1s, w2s, b2s, w1c, b1c, w2c, b2c, w3c, b3c = mlp_params
    hs = jnp.maximum(x @ w1s + b1s, 0.0)
    scores = hs @ w2s + b2s
    hc = jnp.maximum(x @ w1c + b1c, 0.0)
    hc = jnp.maximum(hc @ w2c + b2c, 0.0)
    logits = hc @ w3c + b3c
    return scores, logits


def matched_reference(box_feats, q_feats, box_coords, qparams, fused):
    """Pure-JAX reference using the SAME fused weights / bf16 operand casts as
    the Pallas kernel (tight-tolerance check of the kernel itself)."""
    w1b, w1q, w1x, b1f, w2cb, b2c, wos, woc, bo = fused
    q_rnn = gru_question_parser(q_feats, qparams)
    qc = q_rnn @ w1q + b1f                                        # (B, 256)
    h = jnp.einsum('bdi,io->bdo', box_feats.astype(jnp.bfloat16), w1b,
                   preferred_element_type=jnp.float32)
    h = h + jnp.einsum('bdi,io->bdo', box_coords.astype(jnp.bfloat16), w1x,
                       preferred_element_type=jnp.float32)
    h = h + qc[:, None, :]
    h = jnp.maximum(h, 0.0)
    hs, hc = h[..., :LINSIZE], h[..., LINSIZE:]
    hc2 = jnp.einsum('bdi,io->bdo', hc.astype(jnp.bfloat16), w2cb,
                     preferred_element_type=jnp.float32) + b2c
    hc2 = jnp.maximum(hc2, 0.0)
    out = jnp.einsum('bdi,io->bdo', hs.astype(jnp.bfloat16), wos,
                     preferred_element_type=jnp.float32)
    out = out + jnp.einsum('bdi,io->bdo', hc2.astype(jnp.bfloat16), woc,
                           preferred_element_type=jnp.float32)
    out = out + bo
    return out[..., 0:1], out[..., 1:1 + NCLS]


if __name__ == "__main__":
    key = jax.random.PRNGKey(0)
    k_in, k_par = jax.random.split(key)
    k1, k2, k3 = jax.random.split(k_in, 3)

    # batch, boxes-per-image (deliberately not a multiple of 8 to exercise the
    # masked-tail path with no HBM padding), question length
    B, D, T = 2, 10, 8

    # Upstream producer emits box features directly in bf16 (halves the
    # dominant HBM stream); coordinates arrive as f32 (cast in-kernel).
    box_feats = jax.random.normal(k1, (B, D, I_CNN), jnp.float32).astype(jnp.bfloat16)
    box_coords = jax.random.normal(k2, (B, D, BOXCOORDS), jnp.float32)
    q_feats = jax.random.randint(k3, (B, T), 0, VOCAB, jnp.int32)
    index = jnp.zeros((B,), jnp.int32)  # unused, kept for signature parity

    qparams, mlp_params = make_params(k_par)

    scores, logits = rn_forward(box_feats, q_feats, box_coords, index,
                                qparams, mlp_params)
    scores, logits = jax.block_until_ready((scores, logits))
    assert scores.shape == (B, D, 1) and logits.shape == (B, D, NCLS)

    # (1) tight check against a reference using the identical fused weights and
    #     bf16 MXU operand casts (validates the kernel exactly).
    fused = _fuse_mlp_params(mlp_params)
    ref_s_m, ref_l_m = matched_reference(box_feats, q_feats, box_coords,
                                         qparams, fused)
    assert jnp.allclose(scores, ref_s_m, atol=1e-3)
    assert jnp.allclose(logits, ref_l_m, atol=1e-3)

    # (2) check against the full-precision f32 PyTorch-structure reference;
    #     loose tolerance covers the bf16 MXU operand rounding.
    ref_s, ref_l = reference_forward(box_feats.astype(jnp.float32), q_feats,
                                     box_coords, qparams, mlp_params)
    assert jnp.allclose(scores, ref_s, atol=2e-2)
    assert jnp.allclose(logits, ref_l, atol=2e-2)

    print("KERNEL_OK")
</pallas_src>

<mosaic_0001>
module attributes {stable_mosaic.version = 11 : i64} {
  func.func @_rn_heads_kernel(%arg0: i32, %arg1: i32, %arg2: memref<1x16x128xbf16, #tpu.memory_space<vmem>>, %arg3: memref<1x16x6xf32, #tpu.memory_space<vmem>>, %arg4: memref<1x1x256xf32, #tpu.memory_space<vmem>>, %arg5: memref<128x256xbf16, #tpu.memory_space<vmem>>, %arg6: memref<6x256xbf16, #tpu.memory_space<vmem>>, %arg7: memref<128x128xbf16, #tpu.memory_space<vmem>>, %arg8: memref<1x128xf32, #tpu.memory_space<vmem>>, %arg9: memref<128x8xbf16, #tpu.memory_space<vmem>>, %arg10: memref<128x8xbf16, #tpu.memory_space<vmem>>, %arg11: memref<1x8xf32, #tpu.memory_space<vmem>>, %arg12: memref<1x16x8xf32, #tpu.memory_space<vmem>>) attributes {dimension_semantics = [#tpu.dimension_semantics<parallel>, #tpu.dimension_semantics<parallel>], iteration_bounds = array<i64: 2, 1>, scalar_prefetch = 0 : i64, scratch_operands = 0 : i64, tpu.core_type = #tpu.core_type<tc>, window_params = [{transform_indices = @transform_0, window_bounds = array<i64: 1, 16, 128>}, {transform_indices = @transform_1, window_bounds = array<i64: 1, 16, 6>}, {transform_indices = @transform_2, window_bounds = array<i64: 1, 1, 256>}, {pipeline_mode = #tpu.pipeline_mode<synchronous>, transform_indices = @transform_3, window_bounds = array<i64: 128, 256>}, {pipeline_mode = #tpu.pipeline_mode<synchronous>, transform_indices = @transform_4, window_bounds = array<i64: 6, 256>}, {pipeline_mode = #tpu.pipeline_mode<synchronous>, transform_indices = @transform_5, window_bounds = array<i64: 128, 128>}, {pipeline_mode = #tpu.pipeline_mode<synchronous>, transform_indices = @transform_6, window_bounds = array<i64: 1, 128>}, {pipeline_mode = #tpu.pipeline_mode<synchronous>, transform_indices = @transform_7, window_bounds = array<i64: 128, 8>}, {pipeline_mode = #tpu.pipeline_mode<synchronous>, transform_indices = @transform_8, window_bounds = array<i64: 128, 8>}, {pipeline_mode = #tpu.pipeline_mode<synchronous>, transform_indices = @transform_9, window_bounds = array<i64: 1, 8>}, {transform_indices = @transform_10, window_bounds = array<i64: 1, 16, 8>}]} {
    %c0 = arith.constant 0 : index
    %c0_0 = arith.constant 0 : index
    %c0_1 = arith.constant 0 : index
    %0 = vector.load %arg2[%c0, %c0_0, %c0_1] : memref<1x16x128xbf16, #tpu.memory_space<vmem>>, vector<1x16x128xbf16>
    %1 = vector.shape_cast %0 : vector<1x16x128xbf16> to vector<16x128xbf16>
    %c0_2 = arith.constant 0 : index
    %c0_3 = arith.constant 0 : index
    %c0_4 = arith.constant 0 : index
    %2 = vector.load %arg3[%c0_2, %c0_3, %c0_4] : memref<1x16x6xf32, #tpu.memory_space<vmem>>, vector<1x16x6xf32>
    %3 = vector.shape_cast %2 : vector<1x16x6xf32> to vector<16x6xf32>
    %4 = arith.truncf %3 : vector<16x6xf32> to vector<16x6xbf16>
    %c0_5 = arith.constant 0 : index
    %c0_6 = arith.constant 0 : index
    %5 = vector.load %arg5[%c0_5, %c0_6] : memref<128x256xbf16, #tpu.memory_space<vmem>>, vector<128x256xbf16>
    %cst = arith.constant dense<0.000000e+00> : vector<16x256xf32>
    %6 = tpu.matmul %1, %5, %cst {dimension_numbers = #tpu.dot_dimension_numbers<[1], [0], [0], [1], [0, 0, 1, 1], [], []>} : vector<16x128xbf16>, vector<128x256xbf16>, vector<16x256xf32> -> vector<16x256xf32>
    %c0_7 = arith.constant 0 : index
    %c0_8 = arith.constant 0 : index
    %7 = vector.load %arg6[%c0_7, %c0_8] : memref<6x256xbf16, #tpu.memory_space<vmem>>, vector<6x256xbf16>
    %cst_9 = arith.constant dense<0.000000e+00> : vector<16x256xf32>
    %8 = tpu.matmul %4, %7, %cst_9 {dimension_numbers = #tpu.dot_dimension_numbers<[1], [0], [0], [1], [0, 0, 1, 1], [], []>} : vector<16x6xbf16>, vector<6x256xbf16>, vector<16x256xf32> -> vector<16x256xf32>
    %9 = arith.addf %6, %8 : vector<16x256xf32>
    %c0_10 = arith.constant 0 : index
    %c0_11 = arith.constant 0 : index
    %c0_12 = arith.constant 0 : index
    %10 = vector.load %arg4[%c0_10, %c0_11, %c0_12] : memref<1x1x256xf32, #tpu.memory_space<vmem>>, vector<1x1x256xf32>
    %11 = vector.shape_cast %10 : vector<1x1x256xf32> to vector<1x256xf32>
    %12 = vector.broadcast %11 : vector<1x256xf32> to vector<16x256xf32>
    %13 = arith.addf %9, %12 : vector<16x256xf32>
    %cst_13 = arith.constant 0.000000e+00 : f32
    %14 = vector.broadcast %cst_13 : f32 to vector<16x256xf32>
    %15 = arith.maximumf %13, %14 : vector<16x256xf32>
    %16 = vector.extract_strided_slice %15 {offsets = [0, 0], sizes = [16, 128], strides = [1, 1]} : vector<16x256xf32> to vector<16x128xf32>
    %17 = vector.extract_strided_slice %15 {offsets = [0, 128], sizes = [16, 128], strides = [1, 1]} : vector<16x256xf32> to vector<16x128xf32>
    %18 = arith.truncf %17 : vector<16x128xf32> to vector<16x128xbf16>
    %c0_14 = arith.constant 0 : index
    %c0_15 = arith.constant 0 : index
    %19 = vector.load %arg7[%c0_14, %c0_15] : memref<128x128xbf16, #tpu.memory_space<vmem>>, vector<128x128xbf16>
    %cst_16 = arith.constant dense<0.000000e+00> : vector<16x128xf32>
    %20 = tpu.matmul %18, %19, %cst_16 {dimension_numbers = #tpu.dot_dimension_numbers<[1], [0], [0], [1], [0, 0, 1, 1], [], []>} : vector<16x128xbf16>, vector<128x128xbf16>, vector<16x128xf32> -> vector<16x128xf32>
    %c0_17 = arith.constant 0 : index
    %c0_18 = arith.constant 0 : index
    %21 = vector.load %arg8[%c0_17, %c0_18] : memref<1x128xf32, #tpu.memory_space<vmem>>, vector<1x128xf32>
    %22 = vector.broadcast %21 : vector<1x128xf32> to vector<16x128xf32>
    %23 = arith.addf %20, %22 : vector<16x128xf32>
    %cst_19 = arith.constant 0.000000e+00 : f32
    %24 = vector.broadcast %cst_19 : f32 to vector<16x128xf32>
    %25 = arith.maximumf %23, %24 : vector<16x128xf32>
    %26 = arith.truncf %16 : vector<16x128xf32> to vector<16x128xbf16>
    %c0_20 = arith.constant 0 : index
    %c0_21 = arith.constant 0 : index
    %27 = vector.load %arg9[%c0_20, %c0_21] : memref<128x8xbf16, #tpu.memory_space<vmem>>, vector<128x8xbf16>
    %cst_22 = arith.constant dense<0.000000e+00> : vector<16x8xf32>
    %28 = tpu.matmul %26, %27, %cst_22 {dimension_numbers = #tpu.dot_dimension_numbers<[1], [0], [0], [1], [0, 0, 1, 1], [], []>} : vector<16x128xbf16>, vector<128x8xbf16>, vector<16x8xf32> -> vector<16x8xf32>
    %29 = arith.truncf %25 : vector<16x128xf32> to vector<16x128xbf16>
    %c0_23 = arith.constant 0 : index
    %c0_24 = arith.constant 0 : index
    %30 = vector.load %arg10[%c0_23, %c0_24] : memref<128x8xbf16, #tpu.memory_space<vmem>>, vector<128x8xbf16>
    %cst_25 = arith.constant dense<0.000000e+00> : vector<16x8xf32>
    %31 = tpu.matmul %29, %30, %cst_25 {dimension_numbers = #tpu.dot_dimension_numbers<[1], [0], [0], [1], [0, 0, 1, 1], [], []>} : vector<16x128xbf16>, vector<128x8xbf16>, vector<16x8xf32> -> vector<16x8xf32>
    %32 = arith.addf %28, %31 : vector<16x8xf32>
    %c0_26 = arith.constant 0 : index
    %c0_27 = arith.constant 0 : index
    %33 = vector.load %arg11[%c0_26, %c0_27] : memref<1x8xf32, #tpu.memory_space<vmem>>, vector<1x8xf32>
    %34 = vector.broadcast %33 : vector<1x8xf32> to vector<16x8xf32>
    %35 = arith.addf %32, %34 : vector<16x8xf32>
    %c0_28 = arith.constant 0 : index
    %c0_29 = arith.constant 0 : index
    %c0_30 = arith.constant 0 : index
    %36 = vector.load %arg12[%c0_28, %c0_29, %c0_30] : memref<1x16x8xf32, #tpu.memory_space<vmem>>, vector<1x16x8xf32>
    %37 = vector.shape_cast %36 : vector<1x16x8xf32> to vector<16x8xf32>
    %38 = vector.shape_cast %35 : vector<16x8xf32> to vector<1x16x8xf32>
    tpu.vector_store %arg12[%c0_28, %c0_29, %c0_30], %38 {strides = array<i32>} : memref<1x16x8xf32, #tpu.memory_space<vmem>>, vector<1x16x8xf32>,
    return
  }
  func.func @transform_0(%arg0: i32, %arg1: i32) -> (i32, i32, i32) {
    %c0_i32 = arith.constant 0 : i32
    %c0_i32_0 = arith.constant 0 : i32
    return %arg0, %arg1, %c0_i32 : i32, i32, i32
  }
  func.func @transform_1(%arg0: i32, %arg1: i32) -> (i32, i32, i32) {
    %c0_i32 = arith.constant 0 : i32
    %c0_i32_0 = arith.constant 0 : i32
    return %arg0, %arg1, %c0_i32 : i32, i32, i32
  }
  func.func @transform_2(%arg0: i32, %arg1: i32) -> (i32, i32, i32) {
    %c0_i32 = arith.constant 0 : i32
    %c0_i32_0 = arith.constant 0 : i32
    %c0_i32_1 = arith.constant 0 : i32
    return %arg0, %c0_i32, %c0_i32_0 : i32, i32, i32
  }
  func.func @transform_3(%arg0: i32, %arg1: i32) -> (i32, i32) {
    %c0_i32 = arith.constant 0 : i32
    %c0_i32_0 = arith.constant 0 : i32
    %c0_i32_1 = arith.constant 0 : i32
    return %c0_i32, %c0_i32_0 : i32, i32
  }
  func.func @transform_4(%arg0: i32, %arg1: i32) -> (i32, i32) {
    %c0_i32 = arith.constant 0 : i32
    %c0_i32_0 = arith.constant 0 : i32
    %c0_i32_1 = arith.constant 0 : i32
    return %c0_i32, %c0_i32_0 : i32, i32
  }
  func.func @transform_5(%arg0: i32, %arg1: i32) -> (i32, i32) {
    %c0_i32 = arith.constant 0 : i32
    %c0_i32_0 = arith.constant 0 : i32
    %c0_i32_1 = arith.constant 0 : i32
    return %c0_i32, %c0_i32_0 : i32, i32
  }
  func.func @transform_6(%arg0: i32, %arg1: i32) -> (i32, i32) {
    %c0_i32 = arith.constant 0 : i32
    %c0_i32_0 = arith.constant 0 : i32
    %c0_i32_1 = arith.constant 0 : i32
    return %c0_i32, %c0_i32_0 : i32, i32
  }
  func.func @transform_7(%arg0: i32, %arg1: i32) -> (i32, i32) {
    %c0_i32 = arith.constant 0 : i32
    %c0_i32_0 = arith.constant 0 : i32
    %c0_i32_1 = arith.constant 0 : i32
    return %c0_i32, %c0_i32_0 : i32, i32
  }
  func.func @transform_8(%arg0: i32, %arg1: i32) -> (i32, i32) {
    %c0_i32 = arith.constant 0 : i32
    %c0_i32_0 = arith.constant 0 : i32
    %c0_i32_1 = arith.constant 0 : i32
    return %c0_i32, %c0_i32_0 : i32, i32
  }
  func.func @transform_9(%arg0: i32, %arg1: i32) -> (i32, i32) {
    %c0_i32 = arith.constant 0 : i32
    %c0_i32_0 = arith.constant 0 : i32
    %c0_i32_1 = arith.constant 0 : i32
    return %c0_i32, %c0_i32_0 : i32, i32
  }
  func.func @transform_10(%arg0: i32, %arg1: i32) -> (i32, i32, i32) {
    %c0_i32 = arith.constant 0 : i32
    %c0_i32_0 = arith.constant 0 : i32
    return %arg0, %arg1, %c0_i32 : i32, i32, i32
  }
}

</mosaic_0001>

<bundles_post_ra>
// kernel: custom-call
= control target key start
LH: loop header
LB: loop body
LE: loop exit
PB: predicated region body
PF: predicated region fallthrough
CT: control target
= control target key end

     0   :  { %s6_s0 = inlined_call_operand.vmem [shape: f32[2,64], index: 0, kind: output, shape index: {}]  }

// kernel: rn_forward.1
= control target key start
LH: loop header
LB: loop body
LE: loop exit
PB: predicated region body
PF: predicated region fallthrough
CT: control target
= control target key end

     0   :  { %s1454_s13 = smov 0   ;;  %s1456_s14 = smov 0   ;;  %s1664_s0 = inlined_call_operand.vmem [shape: bf16[2,10,128], index: 0, kind: input, shape index: {}]   ;;  %s1665_s1 = inlined_call_operand.vmem [shape: f32[2,10,6], index: 1, kind: input, shape index: {}]   ;;  %s1666_s2 = inlined_call_operand.vmem [shape: f32[2,1,256], index: 2, kind: input, shape index: {}]   ;;  %s1667_s3 = inlined_call_operand.vmem [shape: bf16[128,256], index: 3, kind: input, shape index: {}]   ;;  %s1668_s4 = inlined_call_operand.vmem [shape: bf16[6,256], index: 4, kind: input, shape index: {}]   ;;  %s1669_s5 = inlined_call_operand.vmem [shape: bf16[128,128], index: 5, kind: input, shape index: {}]   ;;  %s1670_s6 = inlined_call_operand.vmem [shape: f32[1,128], index: 6, kind: input, shape index: {}]   ;;  %s1671_s7 = inlined_call_operand.vmem [shape: bf16[128,8], index: 7, kind: input, shape index: {}]   ;;  %s1672_s8 = inlined_call_operand.vmem [shape: bf16[128,8], index: 8, kind: input, shape index: {}]   ;;  %s1673_s9 = inlined_call_operand.vmem [shape: f32[1,8], index: 9, kind: input, shape index: {}]   ;;  %s1674_s10 = inlined_call_operand.vmem [shape: f32[2,10,8], index: 10, kind: output, shape index: {}]  }
   0x1   :  { %s1458_s15 = smov 0  }
   0x2 LB: > { %s32_s16 = sadd.s32 1, %s1390_s14  ;;  %p1143_p0 = scmp.ge.s32.totalorder %s1394_s15, 1  ;;  %s1394_s15 = sphi %s1458_s15, %s20_s15   ;;  %s1390_s14 = sphi %s1456_s14, %s1676_s14   ;;  %s1386_s13 = sphi %s1454_s13, %s1675_s13  }
   0x3   : > { %p34_p1 = scmp.ge.s32.totalorder %s32_s16, 2  ;;  %p359_p2 = scmp.lt.s32.totalorder %s1394_s15, 3 }
   0x5   : > { %s1678_s16 = smov (%p34_p1, %s32_s16), 0  ;;  %p360_p3 = pnand %p1143_p0, %p359_p2 }
   0x6   : > { %v474_v0 = vld [vmem:[%s1668_s4] sm:$0x77] (!%p360_p3)  ;;  %vm484_vm0 = vcmask (!%p360_p3), 1042432   ;;  %v1396_v3 = vmov (!%p360_p3), 0   ;;  %p419_p4 = scmp.lt.s32.totalorder (!%p360_p3), %s1386_s13, 1  ;;  %v1397_v6 = vmov (!%p360_p3), 0.0   ;;  %v665_v42 = vlaneseq (!%p360_p3) }
   0x7   : > { %363 = sbr.rel (%p360_p3) target bundleno = 712 (0x2c8), region = 60  ;;  %v1152_v1 = vcombine.high (!%p360_p3), %v474_v0, %v474_v0  ;;  %v1151_v2 = vcombine.low (!%p360_p3), %v474_v0, %v474_v0  ;;  %523 = vmatprep.mubr.bf16.mxu0 (!%p360_p3), %v1396_v3  ;;  %v1325_v4 = vld [vmem:[%s1667_s3 + $0x4] ss:$8 sps:$4 sm:$0xff] (!%p360_p3)   ;;  %1230 = vmatprep.subr.bf16.mxu1 (!%p360_p3), %v1397_v6  ;;  %v1323_v7 = vld [vmem:[%s1667_s3] ss:$8 sps:$4 sm:$0xff] (!%p360_p3)   ;;  %vm480_vm1 = vcmask (!%p360_p3), 48128  }
   0x8   : > { %v1328_v11 = vld [vmem:[%s1667_s3 + $0x14] ss:$8 sps:$4 sm:$0xff] (!%p360_p3)   ;;  %v1326_v12 = vld [vmem:[%s1667_s3 + $0x10] ss:$8 sps:$4 sm:$0xff] (!%p360_p3)   ;;  %v1331_v13 = vld [vmem:[%s1667_s3 + $0x24] ss:$8 sps:$4 sm:$0xff] (!%p360_p3)  }
   0x9   : > { %1153 = vmatprep.subr.msk.bf16.mxu0 (!%p360_p3), %vm484_vm0, %v1152_v1  ;;  %v486_v5 = vsel (!%p360_p3), %vm484_vm0, %v1151_v2, 0  ;;  %v1329_v14 = vld [vmem:[%s1667_s3 + $0x20] ss:$8 sps:$4 sm:$0xff] (!%p360_p3)   ;;  %v1334_v16 = vld [vmem:[%s1667_s3 + $0x34] ss:$8 sps:$4 sm:$0xff] (!%p360_p3)   ;;  %vm1398_vm2 = vmmov (!%p360_p3), 0  }
   0xa   : > { %492 = vmatpush1.bf16.msra.mxu0 (!%p360_p3), %v486_v5  ;;  %v1349_v15 = vld [vmem:[%s1669_s5] sm:$0xff] (!%p360_p3)   ;;  %v1351_v17 = vld [vmem:[%s1669_s5 + $0x8] sm:$0xff] (!%p360_p3)   ;;  %v1332_v18 = vld [vmem:[%s1667_s3 + $0x30] ss:$8 sps:$4 sm:$0xff] (!%p360_p3)   ;;  %1246 = vmatprep.mubr.msk.bf16.mxu1 (!%p360_p3), %vm1398_vm2, %v1397_v6  ;;  %v666_v43 = vshrl.u32 (!%p360_p3), %v665_v42, 7  ;;  %vm1019_vm3 = vcmask (!%p360_p3), 64512  }
   0xb   : > { %620 = vmatprep.subr.bf16.mxu0 (!%p360_p3), %v1325_v4  ;;  %1231 = vmatpush3.bf16.msra.mxu1 (!%p360_p3), %v1349_v15  ;;  %v1337_v19 = vld [vmem:[%s1667_s3 + $0x44] ss:$8 sps:$4 sm:$0xff] (!%p360_p3)   ;;  %v1353_v20 = vld [vmem:[%s1669_s5 + $0x10] sm:$0xff] (!%p360_p3)   ;;  %v1335_v21 = vld [vmem:[%s1667_s3 + $0x40] ss:$8 sps:$4 sm:$0xff] (!%p360_p3)  }
   0xc   : > { %1232 = vmatprep.subr.bf16.mxu1 (!%p360_p3), %v1397_v6  ;;  %v1340_v22 = vld [vmem:[%s1667_s3 + $0x54] ss:$8 sps:$4 sm:$0xff] (!%p360_p3)   ;;  %v1338_v24 = vld [vmem:[%s1667_s3 + $0x50] ss:$8 sps:$4 sm:$0xff] (!%p360_p3)   ;;  %v1343_v25 = vld [vmem:[%s1667_s3 + $0x64] ss:$8 sps:$4 sm:$0xff] (!%p360_p3)  }
   0xd   : > { %v1355_v23 = vld [vmem:[%s1669_s5 + $0x18] sm:$0xff] (!%p360_p3)   ;;  %v1357_v26 = vld [vmem:[%s1669_s5 + $0x20] sm:$0xff] (!%p360_p3)   ;;  %v1359_v29 = vld [vmem:[%s1669_s5 + $0x28] sm:$0xff] (!%p360_p3)   ;;  %v667_v44 = vsub.s32 (!%p360_p3), 0, %v666_v43  ;;  %v671_v46 = vsub.s32 (!%p360_p3), 1, %v666_v43 }
   0xe   : > { %s1680_s13 = smov (!%p419_p4, %s1386_s13), 1  ;;  %v1341_v27 = vld [vmem:[%s1667_s3 + $0x60] ss:$8 sps:$4 sm:$0xff]   ;;  %v1346_v28 = vld [vmem:[%s1667_s3 + $0x74] ss:$8 sps:$4 sm:$0xff]  }
   0xf   : > { %s1201_s21 = sshll.u32 %s1680_s13, 4  ;;  %s1200_s29 = sshll.u32 %s1680_s13, 3  ;;  %1233 = vmatpush3.bf16.msra.mxu1 %v1351_v17  ;;  %v1344_v30 = vld [vmem:[%s1667_s3 + $0x70] ss:$8 sps:$4 sm:$0xff]   ;;  %v1348_v32 = vld [vmem:[%s1671_s7] sm:$0xff]   ;;  %v1350_v33 = vld [vmem:[%s1671_s7 + $0x8] sm:$0xff]  }
  0x10   : > { %s436_s24 = scalar_lea.vmem %s1665_s1, %s1201_s21  ;;  %s1500_s18 = scalar_lea.vmem %s1664_s0, %s1200_s29  ;;  %1234 = vmatprep.subr.bf16.mxu1 %v1397_v6  ;;  %v1352_v34 = vld [vmem:[%s1671_s7 + $0x10] sm:$0xff]   ;;  %v1354_v35 = vld [vmem:[%s1671_s7 + $0x18] sm:$0xff]   ;;  %v1356_v36 = vld [vmem:[%s1671_s7 + $0x20] sm:$0xff]  }
  0x11   : > { %v455_v8 = vld [vmem:[%s436_s24] sm:$0xff]  ;;  %v456_v9 = vld [vmem:[%s436_s24 + $0x8] sm:$0xff]  ;;  %v1360_v38 = vld [vmem:[%s1671_s7 + $0x30] sm:$0xff]   ;;  %s1148_s17 = sshll.u32 %s1680_s13, 1  ;;  %s450_s29 = scalar_lea.vmem %s1674_s10, %s1201_s21 }
  0x12   : > { %v457_v10 = vpack.c.bf16 %v456_v9, %v455_v8  ;;  %v1347_v31 = vld [vmem:[%s1500_s18] sm:$0xff]   ;;  %v1358_v37 = vld [vmem:[%s1671_s7 + $0x28] sm:$0xff]   ;;  %v1361_v39 = vld [vmem:[%s1669_s5 + $0x30] sm:$0xff]   ;;  %s441_s20 = scalar_lea.vmem %s1666_s2, %s1148_s17 }
  0x13   : > { %1235 = vmatpush3.bf16.msra.mxu1 %v1353_v20  ;;  %v1362_v40 = vld [vmem:[%s1671_s7 + $0x38] sm:$0xff]   ;;  %v663_v45 = vld [vmem:[%s441_s20] sm:$0x3]  ;;  %v1365_v0 = vld [vmem:[%s1672_s8 + $0x8] sm:$0xff]  }
  0x14   : > { %1154 = vmatmul.mubr.msk.bf16.vlgmr.msra.gmra.mrb[0].mxu0 %vm480_vm1, %v457_v10  ;;  %1236 = vmatprep.subr.bf16.mxu1 %v1397_v6  ;;  %v1363_v41 = vld [vmem:[%s1669_s5 + $0x38] sm:$0xff]   ;;  %v668_v47 = vrot.slane %v663_v45, %v667_v44  ;;  %v672_v48 = vrot.slane %v663_v45, %v671_v46  ;;  %v1364_v62 = vld [vmem:[%s1672_s8] sm:$0xff]   ;;  %v1366_v1 = vld [vmem:[%s1672_s8 + $0x10] sm:$0xff]  }
  0x15   : > { %621 = vmatpush1.bf16.msra.mxu0 %v1323_v7  ;;  %652 = vmatprep.mubr.bf16.mxu0 %v1396_v3  ;;  %v1367_v2 = vld [vmem:[%s1672_s8 + $0x18] sm:$0xff]   ;;  %v1368_v3 = vld [vmem:[%s1672_s8 + $0x20] sm:$0xff]   ;;  %v1369_v4 = vld [vmem:[%s1672_s8 + $0x28] sm:$0xff]  }
  0x16   : > { %622 = vmatprep.subr.bf16.mxu0 %v1328_v11  ;;  %v1370_v5 = vld [vmem:[%s1672_s8 + $0x30] sm:$0xff]   ;;  %v1371_v7 = vld [vmem:[%s1672_s8 + $0x38] sm:$0xff]   ;;  %v1172_v8 = vld [vmem:[%s1670_s6] ss:$0 sm:$0xff] }
  0x17   : > { %1237 = vmatpush3.bf16.msra.mxu1 %v1355_v23 }
  0x18   : > { %1238 = vmatprep.subr.bf16.mxu1 %v1397_v6 }
  0x19   : > { %623 = vmatpush1.bf16.msra.mxu0 %v1326_v12 }
  0x1a   : > { %624 = vmatprep.subr.bf16.mxu0 %v1331_v13 }
  0x1b   : > { %1239 = vmatpush3.bf16.msra.mxu1 %v1357_v26 }
  0x1c   : > { %1240 = vmatprep.subr.bf16.mxu1 %v1397_v6 }
  0x1d   : > { %625 = vmatpush1.bf16.msra.mxu0 %v1329_v14 }
  0x1e   : > { %626 = vmatprep.subr.bf16.mxu0 %v1334_v16 }
  0x1f   : > { %1241 = vmatpush3.bf16.msra.mxu1 %v1359_v29 }
  0x20   : > { %1242 = vmatprep.subr.bf16.mxu1 %v1397_v6 }
  0x21   : > { %627 = vmatpush1.bf16.msra.mxu0 %v1332_v18 }
  0x22   : > { %628 = vmatprep.subr.bf16.mxu0 %v1337_v19 }
  0x23   : > { %1243 = vmatpush3.bf16.msra.mxu1 %v1361_v39 }
  0x24   : > { %1244 = vmatprep.subr.bf16.mxu1 %v1397_v6 }
  0x25   : > { %629 = vmatpush1.bf16.msra.mxu0 %v1335_v21 }
  0x26   : > { %630 = vmatprep.subr.bf16.mxu0 %v1340_v22  ;;  %v1197_v22 = vld [vmem:[%s1673_s9] ss:$0 sm:$0xff] }
  0x27   : > { %1245 = vmatpush3.bf16.msra.mxu1 %v1363_v41 }
  0x28   : > { %1250 = vmatprep.subr.bf16.mxu1 %v1397_v6 }
  0x29   : > { %631 = vmatpush1.bf16.msra.mxu0 %v1338_v24 }
  0x2a   : > { %632 = vmatprep.subr.bf16.mxu0 %v1343_v25 }
  0x2d   : > { %633 = vmatpush1.bf16.msra.mxu0 %v1341_v27 }
  0x2e   : > { %634 = vmatprep.subr.bf16.mxu0 %v1346_v28 }
  0x31   : > { %635 = vmatpush1.bf16.msra.mxu0 %v1344_v30 }
  0x32   : > { %1270 = vmatprep.subr.bf16.mxu0 %v1397_v6 }
  0x34   : > { %653 = vmatmul.mubr.bf16.vlgmr.msra.gmra.mrb[0].mxu0 %v1347_v31 }
  0x35   : > { %1271 = vmatpush3.bf16.msra.mxu0 %v1348_v32  ;;  %1286 = vmatprep.mubr.msk.bf16.mxu0 %vm1398_vm2, %v1397_v6 }
  0x36   : > { %1272 = vmatprep.subr.bf16.mxu0 %v1397_v6 }
  0x39   : > { %1273 = vmatpush3.bf16.msra.mxu0 %v1350_v33 }
  0x3a   : > { %1274 = vmatprep.subr.bf16.mxu0 %v1397_v6 }
  0x3d   : > { %1275 = vmatpush3.bf16.msra.mxu0 %v1352_v34 }
  0x3e   : > { %1276 = vmatprep.subr.bf16.mxu0 %v1397_v6 }
  0x41   : > { %1277 = vmatpush3.bf16.msra.mxu0 %v1354_v35 }
  0x42   : > { %1278 = vmatprep.subr.bf16.mxu0 %v1397_v6 }
  0x45   : > { %1279 = vmatpush3.bf16.msra.mxu0 %v1356_v36 }
  0x46   : > { %1280 = vmatprep.subr.bf16.mxu0 %v1397_v6 }
  0x49   : > { %1281 = vmatpush3.bf16.msra.mxu0 %v1358_v37 }
  0x4a   : > { %1282 = vmatprep.subr.bf16.mxu0 %v1397_v6 }
  0x4d   : > { %1283 = vmatpush3.bf16.msra.mxu0 %v1360_v38 }
  0x4e   : > { %1284 = vmatprep.subr.bf16.mxu0 %v1397_v6 }
  0x51   : > { %1285 = vmatpush3.bf16.msra.mxu0 %v1362_v40 }
 0x107   : > { %v654_v49 = vpop.f32.mrb[0].mxu0 }
 0x108   : > { %v675_v50 = vadd.f32 %v668_v47, %v654_v49  ;;  %v656_v51 = vpop.f32.mrb[1].mxu0 }
 0x109   : > { %v676_v52 = vadd.f32 %v672_v48, %v656_v51  ;;  %v658_v53 = vpop.f32.mrb[2].mxu0 }
 0x10a   : > { %v677_v54 = vadd.f32 %v668_v47, %v658_v53  ;;  %v660_v55 = vpop.f32.mrb[3].mxu0  ;;  %v679_v57 = vmax.f32 %v675_v50, 0.0 }
 0x10b   : > { %v678_v56 = vadd.f32 %v672_v48, %v660_v55  ;;  %v680_v59 = vmax.f32 %v676_v52, 0.0 }
 0x10c   : > { %v681_v58 = vmax.f32 %v677_v54, 0.0 }
 0x10d   : > { %v682_v60 = vmax.f32 %v678_v56, 0.0 }
 0x10e   : > { %v798_v61 = vpack.c.bf16 %v681_v58, %v679_v57 }
 0x10f   : > { %v683_v63 = vpack.c.bf16 %v682_v60, %v680_v59 }
 0x110   : > { %1287 = vmatmul.mubr.bf16.vlgmr.msra.gmra.mrb[4].mxu0 %v798_v61 }
 0x111   : > { %1247 = vmatmul.mubr.bf16.vlgmr.msra.gmra.mrb[0].mxu1 %v683_v63 }
 0x112   : > { %1251 = vmatpush3.bf16.msra.mxu1 %v1364_v62  ;;  %1266 = vmatprep.mubr.msk.bf16.mxu1 %vm1398_vm2, %v1397_v6 }
 0x113   : > { %1252 = vmatprep.subr.bf16.mxu1 %v1397_v6 }
 0x116   : > { %1253 = vmatpush3.bf16.msra.mxu1 %v1365_v0 }
 0x117   : > { %1254 = vmatprep.subr.bf16.mxu1 %v1397_v6 }
 0x11a   : > { %1255 = vmatpush3.bf16.msra.mxu1 %v1366_v1 }
 0x11b   : > { %1256 = vmatprep.subr.bf16.mxu1 %v1397_v6 }
 0x11e   : > { %1257 = vmatpush3.bf16.msra.mxu1 %v1367_v2 }
 0x11f   : > { %1258 = vmatprep.subr.bf16.mxu1 %v1397_v6 }
 0x122   : > { %1259 = vmatpush3.bf16.msra.mxu1 %v1368_v3 }
 0x123   : > { %1260 = vmatprep.subr.bf16.mxu1 %v1397_v6 }
 0x126   : > { %1261 = vmatpush3.bf16.msra.mxu1 %v1369_v4 }
 0x127   : > { %1262 = vmatprep.subr.bf16.mxu1 %v1397_v6 }
 0x12a   : > { %1263 = vmatpush3.bf16.msra.mxu1 %v1370_v5 }
 0x12b   : > { %1264 = vmatprep.subr.bf16.mxu1 %v1397_v6 }
 0x12e   : > { %1265 = vmatpush3.bf16.msra.mxu1 %v1371_v7 }
 0x1e3   : > { %v1003_v9 = vpop.f32.mrb[4].mxu0 }
 0x1e4   : > { %v789_v10 = vpop.f32.mrb[0].mxu1  ;;  %v1288_v11 = vpop.f32.mrb[5].mxu0 }
 0x1e5   : > { %v790_v12 = vadd.f32 %v1172_v8, %v789_v10  ;;  %v1248_v13 = vpop.f32.mrb[1].mxu1  ;;  %v1006_v14 = vpop.f32.mrb[6].mxu0 }
 0x1e6   : > { %v792_v15 = vpop.f32.mrb[2].mxu1  ;;  %v1289_v16 = vpop.f32.mrb[7].mxu0 }
 0x1e7   : > { %v793_v17 = vadd.f32 %v1172_v8, %v792_v15  ;;  %v1249_v6 = vpop.f32.mrb[3].mxu1  ;;  %v796_v18 = vmax.f32 %v790_v12, 0.0 }
 0x1e9   : > { %v797_v19 = vmax.f32 %v793_v17, 0.0 }
 0x1eb   : > { %v815_v20 = vpack.c.bf16 %v797_v19, %v796_v18 }
 0x1ed   : > { %1267 = vmatmul.mubr.bf16.vlgmr.msra.gmra.mrb[4].mxu1 %v815_v20 }
 0x2c0   : > { %v914_v21 = vpop.f32.mrb[4].mxu1 }
 0x2c1   : > { %v1004_v23 = vadd.f32 %v1003_v9, %v914_v21  ;;  %v1268_v24 = vpop.f32.mrb[5].mxu1 }
 0x2c2   : > { %v917_v25 = vpop.f32.mrb[6].mxu1 }
 0x2c3   : > { %v1017_v26 = vadd.f32 %v1197_v22, %v1004_v23  ;;  %v1007_v27 = vadd.f32 %v1006_v14, %v917_v25  ;;  %v1269_v28 = vpop.f32.mrb[7].mxu1 }
 0x2c5   : > { %1020 = vst.msk [vmem:[%s450_s29] sm:$0xff] %vm1019_vm3, %v1017_v26  ;;  %v1018_v29 = vadd.f32 %v1197_v22, %v1007_v27 }
 0x2c7   : > { %1021 = vst.msk [vmem:[%s450_s29 + $0x8] sm:$0xff] %vm1019_vm3, %v1018_v29 }
 0x2c8 PF: > { %s20_s15 = sadd.s32 1, %s1394_s15   ;;  %s1675_s13 = smov %s1390_s14 }
 0x2c9   : > { %p17_p5 = scmp.ge.s32.totalorder %s20_s15, 4   ;;  %s1676_s14 = smov %s1678_s16 }
 0x2cb   :  { %19 = sbr.rel (!%p17_p5) target bundleno = 2 (0x2), region = 96 }

</bundles_post_ra>
